<compile_context>
chip_gen: v7x
topology: tpu7x:2x2x1
jax: 0.10.0
libtpu: 0.0.40
codegen_flags: <defaults>
</compile_context>

<pallas_src>
import functools
import math

import jax
import jax.numpy as jnp
from jax import lax
from jax.experimental import pallas as pl
from jax.experimental.pallas import tpu as pltpu

N_BITS_W = 8                      # weight_quant_params['n_bits']
N_LEVELS_W = 2 ** N_BITS_W
N_BITS_A = 8                      # act quantizer default
N_LEVELS_A = 2 ** N_BITS_A
SIZE_SCALE = 8 // N_BITS_W        # == 1: the packed buffer already has shape [OUT, IN]


def _clip_relu(x, lower, upper):
    # clipping(x, lower, upper) = (x + relu(lower - x)) - relu(x - upper)
    x = x + jnp.maximum(lower - x, 0.0)
    x = x - jnp.maximum(x - upper, 0.0)
    return x


def _round_up(v, m):
    return (v + m - 1) // m * m


def _divisor_tile(padded_dim, max_tile, align):
    """Largest multiple of `align` <= max_tile that divides padded_dim (a multiple of align)."""
    t = min(max_tile, padded_dim)
    t = max((t // align) * align, align)
    while padded_dim % t != 0:
        t -= align
    return t


def _vmem_limit(per_step_bytes):
    # double-buffered working set + headroom, capped below v7x's 64 MiB physical VMEM
    return int(min(56 << 20, max(32 << 20, 3 * per_step_bytes)))


# --------------- Kernel A: LoRA merge + weight fake-quant ([OUT, IN] orientation) -----
def weight_prep_kernel(w_ref, la_ref, lb_ref, dw_ref, zw_ref, o_ref):
    # blocks: w [Tn, Tk], la [R, Tk], lb [Tn, R], dw/zw [Tn, 1], o [Tn, Tk]
    # TODO(synk): intn_dequantizer is assigned externally in the original code (None in
    # __init__); with n_bits=8 (size_scale=1) it is modeled as an identity unpack.
    lora_w = jnp.dot(lb_ref[...], la_ref[...],
                     preferred_element_type=jnp.float32)      # loraB @ loraA tile
    w = w_ref[...] + lora_w
    delta = dw_ref[...]                                       # [Tn, 1] per OUT channel
    zp = zw_ref[...]
    w_int = jnp.round(w / delta) + zp                         # exact divide before round
    w_q = _clip_relu(w_int, 0.0, float(N_LEVELS_W - 1))
    o_ref[...] = ((w_q - zp) * delta).astype(o_ref.dtype)


# --------------- Kernel X: one-shot activation fake-quant (elementwise, mem-bound) ----
def act_quant_kernel(act_ref, x_ref, o_ref):
    # TemporalActivationQuantizer, first-call (inited=False) path: scalar delta / zp.
    delta_a = act_ref[0]
    zp_a = act_ref[1]
    x = x_ref[...]
    x_int = jnp.round(x / delta_a) + zp_a                     # exact divide before round
    x_q = _clip_relu(x_int, 0.0, float(N_LEVELS_A - 1))
    o_ref[...] = ((x_q - zp_a) * delta_a).astype(o_ref.dtype)


# --------------- Kernel B: tiled MXU matmul, output block is the accumulator ----------
def matmul_kernel(x_ref, w_ref, b_ref, o_ref):
    k = pl.program_id(2)

    @pl.when(k == 0)
    def _init():
        o_ref[...] = jnp.zeros_like(o_ref)

    # x [Tm, Tk] contracted with w [Tn, Tk] on the minor dims (q @ k.T pattern);
    # keeps the weight in its natural [OUT, IN] layout (no host/XLA transpose).
    o_ref[...] += lax.dot_general(
        x_ref[...], w_ref[...],
        dimension_numbers=(((1,), (1,)), ((), ())),
        preferred_element_type=jnp.float32)

    @pl.when(k == pl.num_programs(2) - 1)
    def _finish():
        o_ref[...] += b_ref[...]


# ------------------------------------ Wrapper -----------------------------------------
@functools.partial(jax.jit,
                   static_argnames=("tile_m", "tile_n", "tile_k", "w_dtype"))
def quant_module_intnlora_forward(x, packed_weight, lora_a, lora_b,
                                  delta_w, zp_w, bias, act_scalars, *,
                                  tile_m=512, tile_n=512, tile_k=512,
                                  w_dtype=jnp.bfloat16):
    B, S, IN = x.shape
    OUT = packed_weight.shape[0] * SIZE_SCALE
    R = lora_a.shape[0]
    M = B * S
    itemsize_w = jnp.dtype(w_dtype).itemsize

    # ---- static tile / padding selection -------------------------------------------
    OUT_P = _round_up(OUT, 128)
    tn = _divisor_tile(OUT_P, tile_n, 128)             # divides OUT_P -> no extra N waste

    if IN <= tile_k:
        tk = IN                                        # single K step, lane dim = full K
        IN_P = IN
    else:
        tk = _divisor_tile(_round_up(IN, 128), tile_k, 128)
        IN_P = _round_up(IN, tk)                       # K stays tiled (v7x 64 MiB VMEM)

    tm = min(tile_m, _round_up(M, 8))
    M_P = _round_up(M, tm)

    # Give v7x's two TensorCores something to split when the parallel grid is 1x1.
    if (M_P // tm) * (OUT_P // tn) == 1:
        if OUT_P >= 256 and (OUT_P // 2) % 128 == 0:
            tn = OUT_P // 2
        elif M_P >= 256 and M_P % 16 == 0:
            tm = M_P // 2

    # ---- host-side padding only (no transposes; pads are no-ops for aligned shapes) --
    w_oi = packed_weight                               # [OUT, IN] natural orientation
    la = lora_a                                        # [R, IN]
    lb = lora_b                                        # [OUT, R]
    dw = delta_w                                       # [OUT, 1]
    zw = zp_w
    b2 = bias.reshape(1, OUT)
    pad_o = OUT_P - OUT
    pad_i = IN_P - IN
    if pad_o or pad_i:
        w_oi = jnp.pad(w_oi, ((0, pad_o), (0, pad_i)))
        la = jnp.pad(la, ((0, 0), (0, pad_i)))
        lb = jnp.pad(lb, ((0, pad_o), (0, 0)))
        dw = jnp.pad(dw, ((0, pad_o), (0, 0)), constant_values=1.0)   # avoid 1/0
        zw = jnp.pad(zw, ((0, pad_o), (0, 0)))
        b2 = jnp.pad(b2, ((0, 0), (0, pad_o)))

    # ---- Kernel A: LoRA merge + weight fake-quant, emits w_dtype (bf16 by default) ----
    # TODO(synk): when the base weight, LoRA and delta/zp are frozen (inference), call
    # this once and cache w_q across forward steps instead of recomputing it every call.
    tn_a = _divisor_tile(OUT_P, 512, 128)
    tk_a = tk
    est_a = (tn_a * tk_a * 4 + R * tk_a * 4 + tn_a * R * 4 + 2 * tn_a * 4
             + tn_a * tk_a * itemsize_w)
    w_q = pl.pallas_call(
        weight_prep_kernel,
        out_shape=jax.ShapeDtypeStruct((OUT_P, IN_P), w_dtype),
        grid=(OUT_P // tn_a, IN_P // tk_a),
        in_specs=[
            pl.BlockSpec((tn_a, tk_a), lambda j, k: (j, k)),   # base weight [OUT, IN]
            pl.BlockSpec((R, tk_a), lambda j, k: (0, k)),      # loraA
            pl.BlockSpec((tn_a, R), lambda j, k: (j, 0)),      # loraB
            pl.BlockSpec((tn_a, 1), lambda j, k: (j, 0)),      # delta  (per OUT channel)
            pl.BlockSpec((tn_a, 1), lambda j, k: (j, 0)),      # zero_point
        ],
        out_specs=pl.BlockSpec((tn_a, tk_a), lambda j, k: (j, k)),
        compiler_params=pltpu.CompilerParams(
            dimension_semantics=("parallel", "parallel"),
            vmem_limit_bytes=_vmem_limit(est_a)),
    )(w_oi, la, lb, dw, zw)

    # ---- Kernel X: one-shot activation fake-quant (hoisted out of the GEMM) ----------
    x2d = x.reshape(M, IN)
    if M_P != M or IN_P != IN:
        # Zero-padded rows/cols fake-quantize to exactly 0 under the first-call
        # TemporalActivationQuantizer scalars (zp=0.005 lies inside [0, 255]), so padded
        # K columns contribute nothing to the matmul and padded M rows are sliced off.
        # TODO(synk): a zero-point outside [0, 2^n-1] would need explicit masking here.
        x2d = jnp.pad(x2d, ((0, M_P - M), (0, IN_P - IN)))
    est_x = tm * tk * 4 + tm * tk * itemsize_w
    x_dq = pl.pallas_call(
        act_quant_kernel,
        out_shape=jax.ShapeDtypeStruct((M_P, IN_P), w_dtype),
        grid=(M_P // tm, IN_P // tk),
        in_specs=[
            pl.BlockSpec(memory_space=pltpu.MemorySpace.SMEM),   # act (delta, zp) scalars
            pl.BlockSpec((tm, tk), lambda i, k: (i, k)),
        ],
        out_specs=pl.BlockSpec((tm, tk), lambda i, k: (i, k)),
        compiler_params=pltpu.CompilerParams(
            dimension_semantics=("parallel", "parallel"),
            vmem_limit_bytes=_vmem_limit(est_x)),
    )(act_scalars, x2d)

    # ---- Kernel B: MXU-only GEMM, f32 accumulation in the resident output block -------
    est_b = tm * tk * itemsize_w + tn * tk * itemsize_w + tn * 4 + tm * tn * 4
    out2d = pl.pallas_call(
        matmul_kernel,
        out_shape=jax.ShapeDtypeStruct((M_P, OUT_P), jnp.float32),
        grid=(M_P // tm, OUT_P // tn, IN_P // tk),        # reduction axis (K) last
        in_specs=[
            pl.BlockSpec((tm, tk), lambda i, j, k: (i, k)),   # pre-quantized x
            pl.BlockSpec((tn, tk), lambda i, j, k: (j, k)),   # prepared weight [OUT, IN]
            pl.BlockSpec((1, tn), lambda i, j, k: (0, j)),    # bias
        ],
        out_specs=pl.BlockSpec((tm, tn), lambda i, j, k: (i, j)),
        compiler_params=pltpu.CompilerParams(
            dimension_semantics=("parallel", "parallel", "arbitrary"),
            vmem_limit_bytes=_vmem_limit(est_b)),
    )(x_dq, w_q, b2)

    return out2d[:M, :OUT].reshape(B, S, OUT)


# ---------------------------------- Reference -----------------------------------------
def reference_forward(x, packed_weight, lora_a, lora_b, delta_w, zp_w, bias,
                      act_scalars, operand_dtype=None):
    hp = jax.lax.Precision.HIGHEST
    orig_w = packed_weight
    lora_w = jnp.dot(lora_b, lora_a, precision=hp)
    w = orig_w + lora_w
    w_int = jnp.round(w / delta_w) + zp_w
    w_q = _clip_relu(w_int, 0.0, float(N_LEVELS_W - 1))
    w_dq = (w_q - zp_w) * delta_w
    da, za = act_scalars[0], act_scalars[1]
    x_int = jnp.round(x / da) + za
    x_q = _clip_relu(x_int, 0.0, float(N_LEVELS_A - 1))
    x_dq = (x_q - za) * da
    if operand_dtype is not None:     # model the bf16 operand cast of the fast path
        w_dq = w_dq.astype(operand_dtype).astype(jnp.float32)
        x_dq = x_dq.astype(operand_dtype).astype(jnp.float32)
    return jnp.einsum("bsi,oi->bso", x_dq, w_dq, precision=hp) + bias


if __name__ == "__main__":
    B, S, IN, OUT, R = 2, 8, 32, 64, 16

    key = jax.random.PRNGKey(0)
    kx, kw, ka, kb, kd, kz, kbias = jax.random.split(key, 7)

    x = jax.random.normal(kx, (B, S, IN), dtype=jnp.float32)
    # register_buffer('weight', randn([OUT // size_scale, IN]))
    packed_weight = jax.random.normal(kw, (OUT // SIZE_SCALE, IN), dtype=jnp.float32)
    # loraA: kaiming_uniform_(a=sqrt(5)) -> U(-1/sqrt(fan_in), 1/sqrt(fan_in)), fan_in=IN
    bound_a = 1.0 / math.sqrt(float(IN))
    lora_a = jax.random.uniform(ka, (R, IN), jnp.float32, -bound_a, bound_a)
    # loraB is zero-initialized in __init__; use small values so the LoRA path is exercised.
    lora_b = 0.02 * jax.random.normal(kb, (OUT, R), dtype=jnp.float32)
    # UniformAffineQuantizer inits delta/zp ~ randn([OUT, 1]); keep random per-channel
    # scales but bound |delta| away from 0 so the comparison is numerically stable.
    d_raw = jax.random.normal(kd, (OUT, 1), dtype=jnp.float32)
    delta_w = jnp.where(d_raw >= 0, 1.0, -1.0) * (jnp.abs(d_raw) + 0.25)
    zp_w = jax.random.normal(kz, (OUT, 1), dtype=jnp.float32)
    # nn.Linear bias init: U(-1/sqrt(IN), 1/sqrt(IN))
    bias = jax.random.uniform(kbias, (OUT,), jnp.float32, -bound_a, bound_a)
    # TemporalActivationQuantizer first-call scalars
    act_scalars = jnp.array([0.005, 0.005], dtype=jnp.float32)

    # 1) f32-operand path: tight check against the fp32 reference.
    out_f32 = quant_module_intnlora_forward(
        x, packed_weight, lora_a, lora_b, delta_w, zp_w, bias, act_scalars,
        w_dtype=jnp.float32)
    out_f32 = jax.block_until_ready(out_f32)
    ref_f32 = reference_forward(
        x, packed_weight, lora_a, lora_b, delta_w, zp_w, bias, act_scalars)
    assert out_f32.shape == (B, S, OUT)
    err_f32 = float(jnp.max(jnp.abs(out_f32 - ref_f32)))
    assert jnp.allclose(out_f32, ref_f32, rtol=2e-3, atol=2e-3), (
        "f32 mismatch: max abs err = %g" % err_f32)

    # 2) default bf16-operand path (the fast MXU path): check against a reference that
    #    applies the same bf16 operand cast (accumulation stays f32 in both).
    out_bf16 = quant_module_intnlora_forward(
        x, packed_weight, lora_a, lora_b, delta_w, zp_w, bias, act_scalars)
    out_bf16 = jax.block_until_ready(out_bf16)
    ref_bf16 = reference_forward(
        x, packed_weight, lora_a, lora_b, delta_w, zp_w, bias, act_scalars,
        operand_dtype=jnp.bfloat16)
    err_bf16 = float(jnp.max(jnp.abs(out_bf16 - ref_bf16)))
    assert jnp.allclose(out_bf16, ref_bf16, rtol=1e-2, atol=1e-2), (
        "bf16 mismatch: max abs err = %g" % err_bf16)

    print("KERNEL_OK")
</pallas_src>

<mosaic_0001>
module attributes {stable_mosaic.version = 11 : i64} {
  func.func @matmul_kernel(%arg0: i32, %arg1: i32, %arg2: i32, %arg3: memref<16x32xf32, #tpu.memory_space<vmem>>, %arg4: memref<128x32xf32, #tpu.memory_space<vmem>>, %arg5: memref<1x128xf32, #tpu.memory_space<vmem>>, %arg6: memref<16x128xf32, #tpu.memory_space<vmem>>) attributes {dimension_semantics = [#tpu.dimension_semantics<parallel>, #tpu.dimension_semantics<parallel>, #tpu.dimension_semantics<arbitrary>], iteration_bounds = array<i64: 1, 1, 1>, scalar_prefetch = 0 : i64, scratch_operands = 0 : i64, tpu.core_type = #tpu.core_type<tc>, window_params = [{transform_indices = @transform_0, window_bounds = array<i64: 16, 32>}, {transform_indices = @transform_1, window_bounds = array<i64: 128, 32>}, {transform_indices = @transform_2, window_bounds = array<i64: 1, 128>}, {transform_indices = @transform_3, window_bounds = array<i64: 16, 128>}]} {
    %c0_i32 = arith.constant 0 : i32
    %0 = arith.cmpi eq, %arg2, %c0_i32 : i32
    %1 = arith.extui %0 : i1 to i32
    %c0_i32_0 = arith.constant 0 : i32
    %2 = arith.cmpi ne, %1, %c0_i32_0 : i32
    scf.if %2 {
      %cst_10 = arith.constant 0.000000e+00 : f32
      %12 = vector.broadcast %cst_10 : f32 to vector<16x128xf32>
      %c0_11 = arith.constant 0 : index
      %c0_12 = arith.constant 0 : index
      %13 = vector.load %arg6[%c0_11, %c0_12] : memref<16x128xf32, #tpu.memory_space<vmem>>, vector<16x128xf32>
      tpu.vector_store %arg6[%c0_11, %c0_12], %12 {strides = array<i32>} : memref<16x128xf32, #tpu.memory_space<vmem>>, vector<16x128xf32>,
    } else {
    }
    %c0 = arith.constant 0 : index
    %c0_1 = arith.constant 0 : index
    %3 = vector.load %arg6[%c0, %c0_1] : memref<16x128xf32, #tpu.memory_space<vmem>>, vector<16x128xf32>
    %c0_2 = arith.constant 0 : index
    %c0_3 = arith.constant 0 : index
    %4 = vector.load %arg3[%c0_2, %c0_3] : memref<16x32xf32, #tpu.memory_space<vmem>>, vector<16x32xf32>
    %c0_4 = arith.constant 0 : index
    %c0_5 = arith.constant 0 : index
    %5 = vector.load %arg4[%c0_4, %c0_5] : memref<128x32xf32, #tpu.memory_space<vmem>>, vector<128x32xf32>
    %cst = arith.constant dense<0.000000e+00> : vector<16x128xf32>
    %6 = tpu.matmul %4, %5, %cst {dimension_numbers = #tpu.dot_dimension_numbers<[1], [1], [0], [0], [0, 0, 1, 0], [], []>} : vector<16x32xf32>, vector<128x32xf32>, vector<16x128xf32> -> vector<16x128xf32>
    %7 = arith.addf %3, %6 : vector<16x128xf32>
    %c0_6 = arith.constant 0 : index
    %c0_7 = arith.constant 0 : index
    %8 = vector.load %arg6[%c0_6, %c0_7] : memref<16x128xf32, #tpu.memory_space<vmem>>, vector<16x128xf32>
    tpu.vector_store %arg6[%c0_6, %c0_7], %7 {strides = array<i32>} : memref<16x128xf32, #tpu.memory_space<vmem>>, vector<16x128xf32>,
    %c0_i32_8 = arith.constant 0 : i32
    %9 = arith.cmpi eq, %arg2, %c0_i32_8 : i32
    %10 = arith.extui %9 : i1 to i32
    %c0_i32_9 = arith.constant 0 : i32
    %11 = arith.cmpi ne, %10, %c0_i32_9 : i32
    scf.if %11 {
      %c0_10 = arith.constant 0 : index
      %c0_11 = arith.constant 0 : index
      %12 = vector.load %arg6[%c0_10, %c0_11] : memref<16x128xf32, #tpu.memory_space<vmem>>, vector<16x128xf32>
      %c0_12 = arith.constant 0 : index
      %c0_13 = arith.constant 0 : index
      %13 = vector.load %arg5[%c0_12, %c0_13] : memref<1x128xf32, #tpu.memory_space<vmem>>, vector<1x128xf32>
      %14 = vector.broadcast %13 : vector<1x128xf32> to vector<16x128xf32>
      %15 = arith.addf %12, %14 : vector<16x128xf32>
      %c0_14 = arith.constant 0 : index
      %c0_15 = arith.constant 0 : index
      %16 = vector.load %arg6[%c0_14, %c0_15] : memref<16x128xf32, #tpu.memory_space<vmem>>, vector<16x128xf32>
      tpu.vector_store %arg6[%c0_14, %c0_15], %15 {strides = array<i32>} : memref<16x128xf32, #tpu.memory_space<vmem>>, vector<16x128xf32>,
    } else {
    }
    return
  }
  func.func @transform_0(%arg0: i32, %arg1: i32, %arg2: i32) -> (i32, i32) {
    %c0_i32 = arith.constant 0 : i32
    return %arg0, %arg2 : i32, i32
  }
  func.func @transform_1(%arg0: i32, %arg1: i32, %arg2: i32) -> (i32, i32) {
    %c0_i32 = arith.constant 0 : i32
    return %arg1, %arg2 : i32, i32
  }
  func.func @transform_2(%arg0: i32, %arg1: i32, %arg2: i32) -> (i32, i32) {
    %c0_i32 = arith.constant 0 : i32
    %c0_i32_0 = arith.constant 0 : i32
    return %c0_i32, %arg1 : i32, i32
  }
  func.func @transform_3(%arg0: i32, %arg1: i32, %arg2: i32) -> (i32, i32) {
    %c0_i32 = arith.constant 0 : i32
    return %arg0, %arg1 : i32, i32
  }
}

module attributes {stable_mosaic.version = 11 : i64} {
  func.func @act_quant_kernel(%arg0: i32, %arg1: i32, %arg2: memref<2xf32, #tpu.memory_space<smem>>, %arg3: memref<16x32xf32, #tpu.memory_space<vmem>>, %arg4: memref<16x32xf32, #tpu.memory_space<vmem>>) attributes {dimension_semantics = [#tpu.dimension_semantics<parallel>, #tpu.dimension_semantics<parallel>], iteration_bounds = array<i64: 1, 1>, scalar_prefetch = 0 : i64, scratch_operands = 0 : i64, tpu.core_type = #tpu.core_type<tc>, window_params = [{transform_indices = @transform_0, window_bounds = array<i64: 2>}, {transform_indices = @transform_1, window_bounds = array<i64: 16, 32>}, {transform_indices = @transform_2, window_bounds = array<i64: 16, 32>}]} {
    %c0 = arith.constant 0 : index
    %0 = memref.load %arg2[%c0] : memref<2xf32, #tpu.memory_space<smem>>
    %c1 = arith.constant 1 : index
    %1 = memref.load %arg2[%c1] : memref<2xf32, #tpu.memory_space<smem>>
    %c0_0 = arith.constant 0 : index
    %c0_1 = arith.constant 0 : index
    %2 = vector.load %arg3[%c0_0, %c0_1] : memref<16x32xf32, #tpu.memory_space<vmem>>, vector<16x32xf32>
    %3 = vector.broadcast %0 : f32 to vector<16x32xf32>
    %4 = arith.divf %2, %3 : vector<16x32xf32>
    %5 = math.roundeven %4 : vector<16x32xf32>
    %6 = vector.broadcast %1 : f32 to vector<16x32xf32>
    %7 = arith.addf %5, %6 : vector<16x32xf32>
    %cst = arith.constant 0.000000e+00 : f32
    %8 = vector.broadcast %cst : f32 to vector<16x32xf32>
    %9 = arith.subf %8, %7 : vector<16x32xf32>
    %cst_2 = arith.constant 0.000000e+00 : f32
    %10 = vector.broadcast %cst_2 : f32 to vector<16x32xf32>
    %11 = arith.maximumf %9, %10 : vector<16x32xf32>
    %12 = arith.addf %7, %11 : vector<16x32xf32>
    %cst_3 = arith.constant 2.550000e+02 : f32
    %13 = vector.broadcast %cst_3 : f32 to vector<16x32xf32>
    %14 = arith.subf %12, %13 : vector<16x32xf32>
    %cst_4 = arith.constant 0.000000e+00 : f32
    %15 = vector.broadcast %cst_4 : f32 to vector<16x32xf32>
    %16 = arith.maximumf %14, %15 : vector<16x32xf32>
    %17 = arith.subf %12, %16 : vector<16x32xf32>
    %18 = vector.broadcast %1 : f32 to vector<16x32xf32>
    %19 = arith.subf %17, %18 : vector<16x32xf32>
    %20 = vector.broadcast %0 : f32 to vector<16x32xf32>
    %21 = arith.mulf %19, %20 : vector<16x32xf32>
    %c0_5 = arith.constant 0 : index
    %c0_6 = arith.constant 0 : index
    %22 = vector.load %arg4[%c0_5, %c0_6] : memref<16x32xf32, #tpu.memory_space<vmem>>, vector<16x32xf32>
    tpu.vector_store %arg4[%c0_5, %c0_6], %21 {strides = array<i32>} : memref<16x32xf32, #tpu.memory_space<vmem>>, vector<16x32xf32>,
    return
  }
  func.func @transform_0(%arg0: i32, %arg1: i32) -> i32 {
    %c0_i32 = arith.constant 0 : i32
    %c0_i32_0 = arith.constant 0 : i32
    return %c0_i32 : i32
  }
  func.func @transform_1(%arg0: i32, %arg1: i32) -> (i32, i32) {
    %c0_i32 = arith.constant 0 : i32
    return %arg0, %arg1 : i32, i32
  }
  func.func @transform_2(%arg0: i32, %arg1: i32) -> (i32, i32) {
    %c0_i32 = arith.constant 0 : i32
    return %arg0, %arg1 : i32, i32
  }
}

module attributes {stable_mosaic.version = 11 : i64} {
  func.func @weight_prep_kernel(%arg0: i32, %arg1: i32, %arg2: memref<128x32xf32, #tpu.memory_space<vmem>>, %arg3: memref<16x32xf32, #tpu.memory_space<vmem>>, %arg4: memref<128x16xf32, #tpu.memory_space<vmem>>, %arg5: memref<128x1xf32, #tpu.memory_space<vmem>>, %arg6: memref<128x1xf32, #tpu.memory_space<vmem>>, %arg7: memref<128x32xf32, #tpu.memory_space<vmem>>) attributes {dimension_semantics = [#tpu.dimension_semantics<parallel>, #tpu.dimension_semantics<parallel>], iteration_bounds = array<i64: 1, 1>, scalar_prefetch = 0 : i64, scratch_operands = 0 : i64, tpu.core_type = #tpu.core_type<tc>, window_params = [{transform_indices = @transform_0, window_bounds = array<i64: 128, 32>}, {transform_indices = @transform_1, window_bounds = array<i64: 16, 32>}, {transform_indices = @transform_2, window_bounds = array<i64: 128, 16>}, {transform_indices = @transform_3, window_bounds = array<i64: 128, 1>}, {transform_indices = @transform_4, window_bounds = array<i64: 128, 1>}, {transform_indices = @transform_5, window_bounds = array<i64: 128, 32>}]} {
    %c0 = arith.constant 0 : index
    %c0_0 = arith.constant 0 : index
    %0 = vector.load %arg4[%c0, %c0_0] : memref<128x16xf32, #tpu.memory_space<vmem>>, vector<128x16xf32>
    %c0_1 = arith.constant 0 : index
    %c0_2 = arith.constant 0 : index
    %1 = vector.load %arg3[%c0_1, %c0_2] : memref<16x32xf32, #tpu.memory_space<vmem>>, vector<16x32xf32>
    %cst = arith.constant dense<0.000000e+00> : vector<128x32xf32>
    %2 = tpu.matmul %0, %1, %cst {dimension_numbers = #tpu.dot_dimension_numbers<[1], [0], [0], [1], [0, 0, 1, 1], [], []>} : vector<128x16xf32>, vector<16x32xf32>, vector<128x32xf32> -> vector<128x32xf32>
    %c0_3 = arith.constant 0 : index
    %c0_4 = arith.constant 0 : index
    %3 = vector.load %arg2[%c0_3, %c0_4] : memref<128x32xf32, #tpu.memory_space<vmem>>, vector<128x32xf32>
    %4 = arith.addf %3, %2 : vector<128x32xf32>
    %c0_5 = arith.constant 0 : index
    %c0_6 = arith.constant 0 : index
    %5 = vector.load %arg5[%c0_5, %c0_6] : memref<128x1xf32, #tpu.memory_space<vmem>>, vector<128x1xf32>
    %c0_7 = arith.constant 0 : index
    %c0_8 = arith.constant 0 : index
    %6 = vector.load %arg6[%c0_7, %c0_8] : memref<128x1xf32, #tpu.memory_space<vmem>>, vector<128x1xf32>
    %7 = vector.broadcast %5 : vector<128x1xf32> to vector<128x32xf32>
    %8 = arith.divf %4, %7 : vector<128x32xf32>
    %9 = math.roundeven %8 : vector<128x32xf32>
    %10 = vector.broadcast %6 : vector<128x1xf32> to vector<128x32xf32>
    %11 = arith.addf %9, %10 : vector<128x32xf32>
    %cst_9 = arith.constant 0.000000e+00 : f32
    %12 = vector.broadcast %cst_9 : f32 to vector<128x32xf32>
    %13 = arith.subf %12, %11 : vector<128x32xf32>
    %cst_10 = arith.constant 0.000000e+00 : f32
    %14 = vector.broadcast %cst_10 : f32 to vector<128x32xf32>
    %15 = arith.maximumf %13, %14 : vector<128x32xf32>
    %16 = arith.addf %11, %15 : vector<128x32xf32>
    %cst_11 = arith.constant 2.550000e+02 : f32
    %17 = vector.broadcast %cst_11 : f32 to vector<128x32xf32>
    %18 = arith.subf %16, %17 : vector<128x32xf32>
    %cst_12 = arith.constant 0.000000e+00 : f32
    %19 = vector.broadcast %cst_12 : f32 to vector<128x32xf32>
    %20 = arith.maximumf %18, %19 : vector<128x32xf32>
    %21 = arith.subf %16, %20 : vector<128x32xf32>
    %22 = vector.broadcast %6 : vector<128x1xf32> to vector<128x32xf32>
    %23 = arith.subf %21, %22 : vector<128x32xf32>
    %24 = vector.broadcast %5 : vector<128x1xf32> to vector<128x32xf32>
    %25 = arith.mulf %23, %24 : vector<128x32xf32>
    %c0_13 = arith.constant 0 : index
    %c0_14 = arith.constant 0 : index
    %26 = vector.load %arg7[%c0_13, %c0_14] : memref<128x32xf32, #tpu.memory_space<vmem>>, vector<128x32xf32>
    tpu.vector_store %arg7[%c0_13, %c0_14], %25 {strides = array<i32>} : memref<128x32xf32, #tpu.memory_space<vmem>>, vector<128x32xf32>,
    return
  }
  func.func @transform_0(%arg0: i32, %arg1: i32) -> (i32, i32) {
    %c0_i32 = arith.constant 0 : i32
    return %arg0, %arg1 : i32, i32
  }
  func.func @transform_1(%arg0: i32, %arg1: i32) -> (i32, i32) {
    %c0_i32 = arith.constant 0 : i32
    %c0_i32_0 = arith.constant 0 : i32
    return %c0_i32, %arg1 : i32, i32
  }
  func.func @transform_2(%arg0: i32, %arg1: i32) -> (i32, i32) {
    %c0_i32 = arith.constant 0 : i32
    %c0_i32_0 = arith.constant 0 : i32
    return %arg0, %c0_i32 : i32, i32
  }
  func.func @transform_3(%arg0: i32, %arg1: i32) -> (i32, i32) {
    %c0_i32 = arith.constant 0 : i32
    %c0_i32_0 = arith.constant 0 : i32
    return %arg0, %c0_i32 : i32, i32
  }
  func.func @transform_4(%arg0: i32, %arg1: i32) -> (i32, i32) {
    %c0_i32 = arith.constant 0 : i32
    %c0_i32_0 = arith.constant 0 : i32
    return %arg0, %c0_i32 : i32, i32
  }
  func.func @transform_5(%arg0: i32, %arg1: i32) -> (i32, i32) {
    %c0_i32 = arith.constant 0 : i32
    return %arg0, %arg1 : i32, i32
  }
}

</mosaic_0001>

<bundles_post_ra>
// kernel: quant_module_intnlora_forward.4
= control target key start
LH: loop header
LB: loop body
LE: loop exit
PB: predicated region body
PF: predicated region fallthrough
CT: control target
= control target key end

     0   :  { %7 = vsyncpa [#allocation3], 0  ;;  %s114_s0 = inlined_call_operand.vmem [shape: f32[2], index: 0, kind: input, shape index: {}]   ;;  %s115_s1 = inlined_call_operand.vmem [shape: f32[16,32], index: 1, kind: input, shape index: {}]   ;;  %s116_s2 = inlined_call_operand.vmem [shape: f32[16,32], index: 2, kind: output, shape index: {}]  }
   0x1   :  { %s14_s11 = sshll.u32 %s114_s0, 4  ;;  %s15_s11 = int_to_ptr.vmem [resolvable:$true] %s14_s11 }
   0x2   :  { %s69_s12 = scalar_lea.vmem %s15_s11, 16  ;;  %p74_p1 = scmp.lt.s32.totalorder %s15_s11, %s15_s11 }
   0x3   :  { %p70_p0 = scmp.ne.s32.totalorder %s15_s11, %s69_s12  ;;  %p75_p2 = scmp.lt.s32.totalorder %s69_s12, %s69_s12 }
   0x5   :  { %p76_p3 = por %p75_p2, %p74_p1 }
   0x7   :  { %p77_p4 = pnand %p76_p3, %p70_p0 }
   0x9   :  { %80 = shalt.err (!%p77_p4)
}
   0xa   :  { %s83_s13 = smov [#allocation2]  }
   0xb   :  { %17 = dma.vmem_to_smem %s15_s11, 16, %s83_s13, [#allocation3]  }
   0xc   :  { %81 = dma.done.wait [#allocation3], 16  }
   0xd   :  { %82 = vsyncadd [#allocation3], 4294967280 }
   0xe   :  { %23 = sfence }
   0xf   :  { %s24_s14 = sld [smem:[#allocation2]]  ;;  %s61_s15 = sld [smem:[#allocation2 + $0x1]]  ;;  %v26_v1 = vld [vmem:[%s115_s1] sm:$0xff]  ;;  %v27_v2 = vld [vmem:[%s115_s1 + $0x8] sm:$0xff]  ;;  %vm53_vm0 = vcmask 261120  }
  0x15   :  { %v28_v0 = vstv %s24_s14  ;;  %v34_v6 = vstv %s61_s15 }
  0x16   :  { %67 = vrcp.f32 %v28_v0 }
  0x20   :  { %v68_v3 = vpop.eup %67 }
  0x21   :  { %v30_v4 = vmul.f32 %v68_v3, %v26_v1  ;;  %v31_v5 = vmul.f32 %v68_v3, %v27_v2 }
  0x23   :  { %v64_v7 = vround.rtne.f32 %v30_v4  ;;  %v65_v8 = vround.rtne.f32 %v31_v5 }
  0x25   :  { %v35_v9 = vadd.f32 %v64_v7, %v34_v6  ;;  %v36_v10 = vadd.f32 %v65_v8, %v34_v6 }
  0x27   :  { %v37_v11 = vsub.f32 0.0, %v35_v9  ;;  %v38_v12 = vsub.f32 0.0, %v36_v10 }
  0x29   :  { %v39_v13 = vmax.f32 %v37_v11, 0.0  ;;  %v40_v14 = vmax.f32 %v38_v12, 0.0 }
  0x2b   :  { %v41_v15 = vadd.f32 %v39_v13, %v35_v9  ;;  %v42_v16 = vadd.f32 %v40_v14, %v36_v10 }
  0x2d   :  { %v62_v17 = vadd.f32 -255.0, %v41_v15  ;;  %v63_v18 = vadd.f32 -255.0, %v42_v16 }
  0x2f   :  { %v45_v19 = vmax.f32 %v62_v17, 0.0  ;;  %v46_v20 = vmax.f32 %v63_v18, 0.0 }
  0x31   :  { %v47_v21 = vsub.f32 %v41_v15, %v45_v19  ;;  %v48_v22 = vsub.f32 %v42_v16, %v46_v20 }
  0x33   :  { %v49_v23 = vsub.f32 %v47_v21, %v34_v6  ;;  %v50_v24 = vsub.f32 %v48_v22, %v34_v6 }
  0x35   :  { %v51_v25 = vmul.f32 %v49_v23, %v28_v0  ;;  %v52_v26 = vmul.f32 %v50_v24, %v28_v0 }
  0x37   :  { %54 = vst.msk [vmem:[%s116_s2] sm:$0xff] %vm53_vm0, %v51_v25  ;;  %55 = vst.msk [vmem:[%s116_s2 + $0x8] sm:$0xff] %vm53_vm0, %v52_v26 }
  0x38   :  { %60 = vsyncpa [#allocation3], 1 }

// kernel: quant_module_intnlora_forward.5
= control target key start
LH: loop header
LB: loop body
LE: loop exit
PB: predicated region body
PF: predicated region fallthrough
CT: control target
= control target key end

     0   :  { %vm40_vm0 = vcmask 261120   ;;  %s438_s1 = inlined_call_operand.vmem [shape: f32[128,32], index: 1, kind: input, shape index: {}]   ;;  %s439_s0 = inlined_call_operand.vmem [shape: f32[16,32], index: 0, kind: input, shape index: {}]   ;;  %s440_s2 = inlined_call_operand.vmem [shape: f32[1,128], index: 2, kind: input, shape index: {}]   ;;  %s441_s3 = inlined_call_operand.vmem [shape: f32[16,128], index: 3, kind: output, shape index: {}]  }
   0x1   :  { %v24_v0 = vld [vmem:[%s438_s1] sm:$0xff]  ;;  %v25_v1 = vld [vmem:[%s438_s1 + $0x8] sm:$0xff]  ;;  %vm343_vm1 = vmpackc.low %vm40_vm0, %vm40_vm0 }
   0x2   :  { %v266_v3 = vpack.c.bf16 %v25_v1, %v24_v0  ;;  %v26_v4 = vld [vmem:[%s438_s1 + $0x10] sm:$0xff]  ;;  %v27_v5 = vld [vmem:[%s438_s1 + $0x18] sm:$0xff]  ;;  %v22_v7 = vld [vmem:[%s439_s0] sm:$0xff] }
   0x3   :  { %v272_v6 = vpack.c.bf16 %v27_v5, %v26_v4  ;;  %v28_v8 = vld [vmem:[%s438_s1 + $0x20] sm:$0xff]  ;;  %v29_v9 = vld [vmem:[%s438_s1 + $0x28] sm:$0xff]  ;;  %263 = vmatprep.mubr.msk.f32.mxu0 %vm40_vm0, %v22_v7  ;;  %v30_v11 = vld [vmem:[%s438_s1 + $0x30] sm:$0xff] }
   0x4   :  { %268 = vmatprep.subr.msk.bf16.mxu0 %vm343_vm1, %v266_v3  ;;  %v278_v10 = vpack.c.bf16 %v29_v9, %v28_v8  ;;  %v31_v12 = vld [vmem:[%s438_s1 + $0x38] sm:$0xff]  ;;  %v32_v14 = vld [vmem:[%s438_s1 + $0x40] sm:$0xff]  ;;  %v33_v15 = vld [vmem:[%s438_s1 + $0x48] sm:$0xff] }
   0x5   :  { %271 = vmatpush3.bf16.xpose.msk.msra.mxu0 %vm343_vm1, %v266_v3  ;;  %v284_v13 = vpack.c.bf16 %v31_v12, %v30_v11  ;;  %v290_v16 = vpack.c.bf16 %v33_v15, %v32_v14  ;;  %v34_v17 = vld [vmem:[%s438_s1 + $0x50] sm:$0xff]  ;;  %v35_v18 = vld [vmem:[%s438_s1 + $0x58] sm:$0xff]  ;;  %v36_v20 = vld [vmem:[%s438_s1 + $0x60] sm:$0xff] }
   0x6   :  { %274 = vmatprep.subr.msk.bf16.mxu0 %vm343_vm1, %v272_v6  ;;  %v296_v19 = vpack.c.bf16 %v35_v18, %v34_v17  ;;  %v37_v21 = vld [vmem:[%s438_s1 + $0x68] sm:$0xff]  ;;  %v38_v23 = vld [vmem:[%s438_s1 + $0x70] sm:$0xff]  ;;  %v39_v24 = vld [vmem:[%s438_s1 + $0x78] sm:$0xff] }
   0x7   :  { %v302_v22 = vpack.c.bf16 %v37_v21, %v36_v20  ;;  %v308_v25 = vpack.c.bf16 %v39_v24, %v38_v23  ;;  %v23_v26 = vld [vmem:[%s439_s0 + $0x8] sm:$0xff]  ;;  %v212_v28 = vld [vmem:[%s440_s2] ss:$0 sm:$0xff] }
   0xd   :  { %277 = vmatpush3.bf16.xpose.msk.msra.mxu0 %vm343_vm1, %v272_v6 }
   0xe   :  { %280 = vmatprep.subr.msk.bf16.mxu0 %vm343_vm1, %v278_v10 }
  0x15   :  { %283 = vmatpush3.bf16.xpose.msk.msra.mxu0 %vm343_vm1, %v278_v10 }
  0x16   :  { %286 = vmatprep.subr.msk.bf16.mxu0 %vm343_vm1, %v284_v13 }
  0x1d   :  { %289 = vmatpush3.bf16.xpose.msk.msra.mxu0 %vm343_vm1, %v284_v13 }
  0x1e   :  { %292 = vmatprep.subr.msk.bf16.mxu0 %vm343_vm1, %v290_v16 }
  0x25   :  { %295 = vmatpush3.bf16.xpose.msk.msra.mxu0 %vm343_vm1, %v290_v16 }
  0x26   :  { %298 = vmatprep.subr.msk.bf16.mxu0 %vm343_vm1, %v296_v19 }
  0x2d   :  { %301 = vmatpush3.bf16.xpose.msk.msra.mxu0 %vm343_vm1, %v296_v19 }
  0x2e   :  { %304 = vmatprep.subr.msk.bf16.mxu0 %vm343_vm1, %v302_v22 }
  0x35   :  { %307 = vmatpush3.bf16.xpose.msk.msra.mxu0 %vm343_vm1, %v302_v22 }
  0x36   :  { %310 = vmatprep.subr.msk.bf16.mxu0 %vm343_vm1, %v308_v25 }
  0x3d   :  { %313 = vmatpush3.bf16.xpose.msk.msra.mxu0 %vm343_vm1, %v308_v25 }
  0x44   :  { %264 = vmatmul.mubr.msk.f32.vlgmr.msra.gmra.mrb[0].mxu0 %vm40_vm0, %v23_v26 }
 0x117   :  { %v265_v27 = vpop.f32.mrb[0].mxu0 }
 0x118   :  { %v161_v29 = vpop.f32.mrb[1].mxu0  ;;  %v187_v30 = vadd.f32 %v265_v27, %v212_v28 }
 0x119   :  { %v186_v31 = vadd.f32 %v212_v28, %v161_v29 }
 0x11a   :  { %189 = vst [vmem:[%s441_s3 + $0x8] sm:$0xff] %v187_v30 }
 0x11b   :  { %188 = vst [vmem:[%s441_s3] sm:$0xff] %v186_v31 }

// kernel: quant_module_intnlora_forward.3
= control target key start
LH: loop header
LB: loop body
LE: loop exit
PB: predicated region body
PF: predicated region fallthrough
CT: control target
= control target key end

     0   :  { %v804_v0 = vmov 0   ;;  %vm38_vm0 = vcmask 130048   ;;  %vm648_vm1 = vcmask 261120   ;;  %s1289_s3 = inlined_call_operand.vmem [shape: f32[128,1], index: 3, kind: input, shape index: {}]   ;;  %s1290_s1 = inlined_call_operand.vmem [shape: f32[16,32], index: 1, kind: input, shape index: {}]   ;;  %s1291_s2 = inlined_call_operand.vmem [shape: f32[128,16], index: 2, kind: input, shape index: {}]   ;;  %s1292_s4 = inlined_call_operand.vmem [shape: f32[128,1], index: 4, kind: input, shape index: {}]   ;;  %s1293_s0 = inlined_call_operand.vmem [shape: f32[128,32], index: 0, kind: input, shape index: {}]   ;;  %s1294_s5 = inlined_call_operand.vmem [shape: f32[128,32], index: 5, kind: output, shape index: {}]  }
   0x1   :  { %771 = vset.pattern.permute.xlu1 %v804_v0  ;;  %770 = vset.pattern.permute.xlu0 %v804_v0  ;;  %v266_v1 = vld [vmem:[%s1289_s3 + $0x10] sm:$0xff]  ;;  %v264_v2 = vld [vmem:[%s1289_s3] sm:$0xff]  ;;  %v37_v4 = vld [vmem:[%s1290_s1 + $0x8] sm:$0xff] }
   0x2   :  { %v36_v3 = vld [vmem:[%s1290_s1] sm:$0xff]  ;;  %308 = vperm.xlu1 %771, %v266_v1   ;;  %298 = vperm.xlu0 %770, %v264_v2   ;;  %v267_v8 = vld [vmem:[%s1289_s3 + $0x18] sm:$0xff]  ;;  %v265_v9 = vld [vmem:[%s1289_s3 + $0x8] sm:$0xff] }
   0x3   :  { %v747_v5 = vpack.c.bf16 %v37_v4, %v36_v3  ;;  %v20_v6 = vld [vmem:[%s1291_s2] sm:$0xff]  ;;  %v21_v10 = vld [vmem:[%s1291_s2 + $0x8] sm:$0xff]  ;;  %v22_v12 = vld [vmem:[%s1291_s2 + $0x10] sm:$0xff] }
   0x4   :  { %v28_v7 = vld [vmem:[%s1291_s2 + $0x40] sm:$0xff]  ;;  %723 = vmatprep.mubr.msk.f32.mxu0 %vm38_vm0, %v20_v6  ;;  %v29_v11 = vld [vmem:[%s1291_s2 + $0x48] sm:$0xff]  ;;  %v30_v13 = vld [vmem:[%s1291_s2 + $0x50] sm:$0xff] }
   0x5   :  { %735 = vmatprep.mubr.msk.f32.mxu1 %vm38_vm0, %v28_v7  ;;  %748 = vmatprep.subr.bf16.mxu0 %v747_v5  ;;  %v269_v14 = vld [vmem:[%s1289_s3 + $0x28] sm:$0xff]  ;;  %v268_v15 = vld [vmem:[%s1289_s3 + $0x20] sm:$0xff]  ;;  %v23_v16 = vld [vmem:[%s1291_s2 + $0x18] sm:$0xff] }
   0x6   :  { %751 = vmatprep.subr.bf16.mxu1 %v747_v5  ;;  %750 = vmatpush3.bf16.msra.mxu0 %v747_v5  ;;  %v31_v17 = vld [vmem:[%s1291_s2 + $0x58] sm:$0xff]  ;;  %v24_v18 = vld [vmem:[%s1291_s2 + $0x20] sm:$0xff]  ;;  %v270_v21 = vld [vmem:[%s1289_s3 + $0x30] sm:$0xff] }
   0x7   :  { %752 = vmatpush3.bf16.msra.mxu1 %v747_v5  ;;  %313 = vperm.xlu1 %771, %v267_v8   ;;  %v32_v19 = vld [vmem:[%s1291_s2 + $0x60] sm:$0xff]  ;;  %v271_v20 = vld [vmem:[%s1289_s3 + $0x38] sm:$0xff]  ;;  %v25_v22 = vld [vmem:[%s1291_s2 + $0x28] sm:$0xff] }
   0x8   :  { %303 = vperm.xlu0 %770, %v265_v9   ;;  %v33_v23 = vld [vmem:[%s1291_s2 + $0x68] sm:$0xff]  ;;  %v26_v24 = vld [vmem:[%s1291_s2 + $0x30] sm:$0xff]  ;;  %v272_v27 = vld [vmem:[%s1289_s3 + $0x40] sm:$0xff] }
   0x9   :  { %724 = vmatmul.mubr.msk.f32.vlgmr.msra.gmra.mrb[0].mxu0 %vm38_vm0, %v21_v10  ;;  %v34_v25 = vld [vmem:[%s1291_s2 + $0x70] sm:$0xff]  ;;  %v273_v26 = vld [vmem:[%s1289_s3 + $0x48] sm:$0xff]  ;;  %v27_v28 = vld [vmem:[%s1291_s2 + $0x38] sm:$0xff] }
   0xa   :  { %736 = vmatmul.mubr.msk.f32.vlgmr.msra.gmra.mrb[0].mxu1 %vm38_vm0, %v29_v11  ;;  %726 = vmatprep.mubr.msk.f32.mxu0 %vm38_vm0, %v22_v12  ;;  %v35_v29 = vld [vmem:[%s1291_s2 + $0x78] sm:$0xff]  ;;  %v274_v31 = vld [vmem:[%s1289_s3 + $0x50] sm:$0xff]  ;;  %v277_v32 = vld [vmem:[%s1289_s3 + $0x68] sm:$0xff] }
   0xb   :  { %738 = vmatprep.mubr.msk.f32.mxu1 %vm38_vm0, %v30_v13  ;;  %323 = vperm.xlu1 %771, %v269_v14   ;;  %v275_v30 = vld [vmem:[%s1289_s3 + $0x58] sm:$0xff]  ;;  %v276_v33 = vld [vmem:[%s1289_s3 + $0x60] sm:$0xff]  ;;  %v278_v35 = vld [vmem:[%s1289_s3 + $0x70] sm:$0xff] }
   0xc   :  { %318 = vperm.xlu0 %770, %v268_v15   ;;  %v279_v34 = vld [vmem:[%s1289_s3 + $0x78] sm:$0xff]  ;;  %v281_v36 = vld [vmem:[%s1292_s4 + $0x8] sm:$0xff]  ;;  %v280_v37 = vld [vmem:[%s1292_s4] sm:$0xff] }
   0xd   :  { %727 = vmatmul.mubr.msk.f32.gmra.mrb[2].mxu0 %vm38_vm0, %v23_v16  ;;  %v283_v38 = vld [vmem:[%s1292_s4 + $0x18] sm:$0xff]  ;;  %v282_v39 = vld [vmem:[%s1292_s4 + $0x10] sm:$0xff]  ;;  %v285_v40 = vld [vmem:[%s1292_s4 + $0x28] sm:$0xff] }
   0xe   :  { %739 = vmatmul.mubr.msk.f32.gmra.mrb[2].mxu1 %vm38_vm0, %v31_v17  ;;  %729 = vmatprep.mubr.msk.f32.mxu0 %vm38_vm0, %v24_v18  ;;  %v284_v41 = vld [vmem:[%s1292_s4 + $0x20] sm:$0xff]  ;;  %v287_v42 = vld [vmem:[%s1292_s4 + $0x38] sm:$0xff]  ;;  %v286_v43 = vld [vmem:[%s1292_s4 + $0x30] sm:$0xff] }
   0xf   :  { %741 = vmatprep.mubr.msk.f32.mxu1 %vm38_vm0, %v32_v19  ;;  %333 = vperm.xlu1 %771, %v271_v20   ;;  %v289_v44 = vld [vmem:[%s1292_s4 + $0x48] sm:$0xff]  ;;  %v288_v45 = vld [vmem:[%s1292_s4 + $0x40] sm:$0xff]  ;;  %v291_v46 = vld [vmem:[%s1292_s4 + $0x58] sm:$0xff] }
  0x10   :  { %328 = vperm.xlu0 %770, %v270_v21   ;;  %v290_v47 = vld [vmem:[%s1292_s4 + $0x50] sm:$0xff]  ;;  %v293_v48 = vld [vmem:[%s1292_s4 + $0x68] sm:$0xff]  ;;  %v292_v49 = vld [vmem:[%s1292_s4 + $0x60] sm:$0xff] }
  0x11   :  { %730 = vmatmul.mubr.msk.f32.gmra.mrb[4].mxu0 %vm38_vm0, %v25_v22  ;;  %v295_v50 = vld [vmem:[%s1292_s4 + $0x78] sm:$0xff]  ;;  %v294_v51 = vld [vmem:[%s1292_s4 + $0x70] sm:$0xff]  ;;  %v233_v12 = vld [vmem:[%s1293_s0 + $0x8] sm:$0xff] }
  0x12   :  { %742 = vmatmul.mubr.msk.f32.gmra.mrb[4].mxu1 %vm38_vm0, %v33_v23  ;;  %732 = vmatprep.mubr.msk.f32.mxu0 %vm38_vm0, %v26_v24  ;;  %v241_v13 = vld [vmem:[%s1293_s0 + $0x48] sm:$0xff]  ;;  %v232_v15 = vld [vmem:[%s1293_s0] sm:$0xff] }
  0x13   :  { %744 = vmatprep.mubr.msk.f32.mxu1 %vm38_vm0, %v34_v25  ;;  %343 = vperm.xlu1 %771, %v273_v26   ;;  %v240_v16 = vld [vmem:[%s1293_s0 + $0x40] sm:$0xff] }
  0x14   :  { %338 = vperm.xlu0 %770, %v272_v27  }
  0x15   :  { %733 = vmatmul.mubr.msk.f32.gmra.mrb[6].mxu0 %vm38_vm0, %v27_v28  ;;  %v235_v28 = vld [vmem:[%s1293_s0 + $0x18] sm:$0xff] }
  0x16   :  { %745 = vmatmul.mubr.msk.f32.gmra.mrb[6].mxu1 %vm38_vm0, %v35_v29  ;;  %v243_v29 = vld [vmem:[%s1293_s0 + $0x58] sm:$0xff] }
  0x17   :  { %353 = vperm.xlu1 %771, %v275_v30  }
  0x18   :  { %348 = vperm.xlu0 %770, %v274_v31  }
  0x1b   :  { %363 = vperm.xlu1 %771, %v277_v32  }
  0x1c   :  { %358 = vperm.xlu0 %770, %v276_v33  }
  0x1f   :  { %373 = vperm.xlu1 %771, %v279_v34  }
  0x20   :  { %368 = vperm.xlu0 %770, %v278_v35   ;;  %v234_v35 = vld [vmem:[%s1293_s0 + $0x10] sm:$0xff] }
  0x23   :  { %431 = vperm.xlu1 %771, %v281_v36   ;;  %v242_v36 = vld [vmem:[%s1293_s0 + $0x50] sm:$0xff] }
  0x24   :  { %426 = vperm.xlu0 %770, %v280_v37  }
  0x27   :  { %441 = vperm.xlu1 %771, %v283_v38  }
  0x28   :  { %436 = vperm.xlu0 %770, %v282_v39  }
  0x2b   :  { %451 = vperm.xlu1 %771, %v285_v40  }
  0x2c   :  { %446 = vperm.xlu0 %770, %v284_v41  }
  0x2f   :  { %461 = vperm.xlu1 %771, %v287_v42  }
  0x30   :  { %456 = vperm.xlu0 %770, %v286_v43  }
  0x33   :  { %471 = vperm.xlu1 %771, %v289_v44  }
  0x34   :  { %466 = vperm.xlu0 %770, %v288_v45  }
  0x37   :  { %481 = vperm.xlu1 %771, %v291_v46  }
  0x38   :  { %476 = vperm.xlu0 %770, %v290_v47  }
  0x3b   :  { %491 = vperm.xlu1 %771, %v293_v48  }
  0x3c   :  { %486 = vperm.xlu0 %770, %v292_v49  }
  0x3f   :  { %501 = vperm.xlu1 %771, %v295_v50  }
  0x40   :  { %496 = vperm.xlu0 %770, %v294_v51  }
  0x81   :  { %v1001_v52 = vpop.permute.xlu1 %308  ;;  %v1003_v53 = vpop.permute.xlu0 %298 }
  0x82   :  { %772 = vrcp.f32 %v1001_v52 }
  0x83   :  { %774 = vrcp.f32 %v1003_v53 }
  0x86   :  { %v1005_v54 = vpop.permute.xlu1 %313 }
  0x87   :  { %v1007_v55 = vpop.permute.xlu0 %303 }
  0x88   :  { %776 = vrcp.f32 %v1007_v55 }
  0x8a   :  { %v1009_v56 = vpop.permute.xlu1 %323 }
  0x8b   :  { %1306 = vst [vmem:[#allocation2_spill] sm:$0xff] %v1009_v56  ;;  %v1011_v57 = vpop.permute.xlu0 %318 }
  0x8c   :  { %1307 = vst [vmem:[#allocation3_spill] sm:$0xff] %v1011_v57  ;;  %v773_v14 = vpop.eup %772 }
  0x8d   :  { %v775_v17 = vpop.eup %774 }
  0x8e   :  { %v1013_v58 = vpop.permute.xlu1 %333 }
  0x8f   :  { %1308 = vst [vmem:[#allocation4_spill] sm:$0xff] %v1013_v58  ;;  %v1015_v59 = vpop.permute.xlu0 %328 }
  0x90   :  { %1309 = vst [vmem:[#allocation5_spill] sm:$0xff] %v1015_v59 }
  0x92   :  { %v1017_v60 = vpop.permute.xlu1 %343  ;;  %v777_v20 = vpop.eup %776 }
  0x93   :  { %v1019_v61 = vpop.permute.xlu0 %338  ;;  %778 = vrcp.f32 %v1017_v60 }
  0x94   :  { %780 = vrcp.f32 %v1019_v61 }
  0x95   :  { %782 = vrcp.f32 %v1005_v54 }
  0x96   :  { %v1021_v62 = vpop.permute.xlu1 %353  ;;  %784 = vrcp.f32 %v1009_v56 }
  0x97   :  { %v1023_v63 = vpop.permute.xlu0 %348  ;;  %786 = vrcp.f32 %v1021_v62 }
  0x98   :  { %788 = vrcp.f32 %v1023_v63 }
  0x99   :  { %790 = vrcp.f32 %v1011_v57 }
  0x9a   :  { %v1025_v0 = vpop.permute.xlu1 %363  ;;  %792 = vrcp.f32 %v1013_v58 }
  0x9b   :  { %1310 = vst [vmem:[#allocation6_spill] sm:$0xff] %v1025_v0  ;;  %v1027_v1 = vpop.permute.xlu0 %358  ;;  %794 = vrcp.f32 %v1015_v59 }
  0x9c   :  { %1311 = vst [vmem:[#allocation7_spill] sm:$0xff] %v1027_v1  ;;  %796 = vrcp.f32 %v1025_v0 }
  0x9d   :  { %v779_v25 = vpop.eup %778  ;;  %798 = vrcp.f32 %v1027_v1 }
  0x9e   :  { %v1029_v2 = vpop.permute.xlu1 %373  ;;  %v781_v30 = vpop.eup %780 }
  0x9f   :  { %1312 = vst [vmem:[#allocation8_spill] sm:$0xff] %v1029_v2  ;;  %v1031_v3 = vpop.permute.xlu0 %368  ;;  %800 = vrcp.f32 %v1029_v2  ;;  %v783_v37 = vpop.eup %782 }
  0xa0   :  { %1313 = vst [vmem:[#allocation9_spill] sm:$0xff] %v1031_v3  ;;  %802 = vrcp.f32 %v1031_v3  ;;  %v1093_v42 = vpop.eup %784 }
  0xa1   :  { %v787_v49 = vpop.eup %786 }
  0xa2   :  { %v1033_v4 = vpop.permute.xlu1 %431 }
  0xa3   :  { %v1035_v5 = vpop.permute.xlu0 %426 }
  0xa6   :  { %v1037_v6 = vpop.permute.xlu1 %441 }
  0xa7   :  { %v1039_v7 = vpop.permute.xlu0 %436 }
  0xaa   :  { %v1044_v8 = vpop.permute.xlu1 %451 }
  0xab   :  { %v1046_v9 = vpop.permute.xlu0 %446 }
  0xac   :  { %1314 = vst [vmem:[#allocation10_spill] sm:$0xff] %v1046_v9 }
  0xae   :  { %v1054_v10 = vpop.permute.xlu1 %461 }
  0xaf   :  { %1315 = vst [vmem:[#allocation11_spill] sm:$0xff] %v1054_v10  ;;  %v1056_v11 = vpop.permute.xlu0 %456 }
  0xb0   :  { %1316 = vst [vmem:[#allocation12_spill] sm:$0xff] %v1056_v11 }
  0xb2   :  { %v1082_v31 = vpop.permute.xlu1 %471 }
  0xb3   :  { %v1084_v32 = vpop.permute.xlu0 %466 }
  0xdc   :  { %v725_v18 = vpop.f32.mrb[0].mxu0 }
  0xdd   :  { %v737_v19 = vpop.f32.mrb[0].mxu1  ;;  %v249_v21 = vadd.f32 %v725_v18, %v233_v12  ;;  %v153_v23 = vpop.f32.mrb[1].mxu0 }
  0xde   :  { %v257_v22 = vadd.f32 %v737_v19, %v241_v13  ;;  %v193_v24 = vpop.f32.mrb[1].mxu1  ;;  %v248_v26 = vadd.f32 %v232_v15, %v153_v23  ;;  %v789_v15 = vpop.eup %788 }
  0xdf   :  { %v256_v27 = vadd.f32 %v240_v16, %v193_v24  ;;  %v379_v33 = vmul.f32 %v777_v20, %v249_v21  ;;  %v1097_v20 = vpop.eup %790 }
  0xe0   :  { %v395_v34 = vmul.f32 %v779_v25, %v257_v22  ;;  %v377_v38 = vmul.f32 %v775_v17, %v248_v26  ;;  %v728_v40 = vpop.f32.mrb[2].mxu0 }
  0xe1   :  { %v393_v39 = vmul.f32 %v781_v30, %v256_v27  ;;  %v740_v41 = vpop.f32.mrb[2].mxu1  ;;  %v754_v43 = vround.rtne.f32 %v379_v33  ;;  %v251_v45 = vadd.f32 %v728_v40, %v235_v28  ;;  %v163_v47 = vpop.f32.mrb[3].mxu0 }
  0xe2   :  { %v762_v44 = vround.rtne.f32 %v395_v34  ;;  %v259_v46 = vadd.f32 %v740_v41, %v243_v29  ;;  %v203_v48 = vpop.f32.mrb[3].mxu1  ;;  %v753_v50 = vround.rtne.f32 %v377_v38  ;;  %v250_v12 = vadd.f32 %v234_v35, %v163_v47  ;;  %v1105_v27 = vpop.eup %792 }
  0xe3   :  { %v761_v51 = vround.rtne.f32 %v393_v39  ;;  %v258_v13 = vadd.f32 %v242_v36, %v203_v48  ;;  %v505_v16 = vadd.f32 %v754_v43, %v1033_v4  ;;  %v383_v18 = vmul.f32 %v783_v37, %v251_v45  ;;  %1317 = vst [vmem:[#allocation13_spill] sm:$0xff] %v1105_v27  ;;  %v1111_v36 = vpop.eup %794  ;;  %v1113_v37 = vpop.permute.xlu1 %481 }
  0xe4   :  { %v513_v17 = vadd.f32 %v762_v44, %v1082_v31  ;;  %v399_v19 = vmul.f32 %v787_v49, %v259_v46  ;;  %v504_v21 = vadd.f32 %v753_v50, %v1035_v5  ;;  %v381_v23 = vmul.f32 %v773_v14, %v250_v12  ;;  %v1101_v25 = vpop.f32.mrb[4].mxu0  ;;  %1318 = vst [vmem:[#allocation14_spill] sm:$0xff] %v1111_v36  ;;  %v1115_v41 = vpop.eup %796 }
  0xe5   :  { %v512_v22 = vadd.f32 %v761_v51, %v1084_v32  ;;  %v397_v24 = vmul.f32 %v789_v15, %v258_v13  ;;  %v1103_v26 = vpop.f32.mrb[4].mxu1  ;;  %v521_v28 = vsub.f32 0.0, %v505_v16  ;;  %v756_v30 = vround.rtne.f32 %v383_v18  ;;  %v1107_v34 = vpop.f32.mrb[5].mxu0 }
  0xe6   :  { %v529_v29 = vsub.f32 0.0, %v513_v17  ;;  %v764_v33 = vround.rtne.f32 %v399_v19  ;;  %v1109_v35 = vpop.f32.mrb[5].mxu1  ;;  %v520_v14 = vsub.f32 0.0, %v504_v21  ;;  %v755_v39 = vround.rtne.f32 %v381_v23  ;;  %v1117_v43 = vpop.permute.xlu0 %476 }
  0xe7   :  { %v528_v38 = vsub.f32 0.0, %v512_v22  ;;  %v763_v40 = vround.rtne.f32 %v397_v24  ;;  %v537_v44 = vmax.f32 %v521_v28, 0.0  ;;  %v507_v46 = vadd.f32 %v756_v30, %v1037_v6  ;;  %v1121_v48 = vpop.eup %798 }
  0xe8   :  { %v545_v45 = vmax.f32 %v529_v29, 0.0  ;;  %v515_v47 = vadd.f32 %v764_v33, %v1113_v37  ;;  %v536_v49 = vmax.f32 %v520_v14, 0.0  ;;  %v506_v51 = vadd.f32 %v755_v39, %v1039_v7  ;;  %v1125_v13 = vpop.f32.mrb[6].mxu0  ;;  %v1129_v18 = vpop.eup %800 }
  0xe9   :  { %v544_v50 = vmax.f32 %v528_v38, 0.0  ;;  %v514_v12 = vadd.f32 %v763_v40, %v1117_v43  ;;  %v1127_v15 = vpop.f32.mrb[6].mxu1  ;;  %1319 = vst [vmem:[#allocation15_spill] sm:$0xff] %v1129_v18  ;;  %v553_v19 = vadd.f32 %v537_v44, %v505_v16  ;;  %v523_v24 = vsub.f32 0.0, %v507_v46  ;;  %v1131_v29 = vpop.f32.mrb[7].mxu0 }
  0xea   :  { %v561_v23 = vadd.f32 %v545_v45, %v513_v17  ;;  %v531_v28 = vsub.f32 0.0, %v515_v47  ;;  %v1133_v30 = vpop.f32.mrb[7].mxu1  ;;  %v1135_v33 = vpop.eup %802  ;;  %v552_v14 = vadd.f32 %v536_v49, %v504_v21  ;;  %v522_v39 = vsub.f32 0.0, %v506_v51 }
  0xeb   :  { %1320 = vst [vmem:[#allocation16_spill] sm:$0xff] %v1135_v33  ;;  %v560_v38 = vadd.f32 %v544_v50, %v512_v22  ;;  %v530_v40 = vsub.f32 0.0, %v514_v12  ;;  %v686_v3 = vadd.f32 -255.0, %v553_v19  ;;  %v539_v2 = vmax.f32 %v523_v24, 0.0 }
  0xec   :  { %v694_v59 = vadd.f32 -255.0, %v561_v23  ;;  %v547_v58 = vmax.f32 %v531_v28, 0.0  ;;  %v685_v1 = vadd.f32 -255.0, %v552_v14  ;;  %v538_v17 = vmax.f32 %v522_v39, 0.0 }
  0xed   :  { %v693_v16 = vadd.f32 -255.0, %v560_v38  ;;  %v546_v44 = vmax.f32 %v530_v40, 0.0  ;;  %v585_v45 = vmax.f32 %v686_v3, 0.0  ;;  %v555_v0 = vadd.f32 %v539_v2, %v507_v46 }
  0xee   :  { %v593_v57 = vmax.f32 %v694_v59, 0.0  ;;  %v563_v56 = vadd.f32 %v547_v58, %v515_v47  ;;  %v584_v11 = vmax.f32 %v685_v1, 0.0  ;;  %v554_v33 = vadd.f32 %v538_v17, %v506_v51 }
  0xef   :  { %v592_v10 = vmax.f32 %v693_v16, 0.0  ;;  %v562_v36 = vadd.f32 %v546_v44, %v514_v12  ;;  %v601_v21 = vsub.f32 %v553_v19, %v585_v45  ;;  %v688_v49 = vadd.f32 -255.0, %v555_v0  ;;  %v1197_v19 = vpop.permute.xlu1 %491  ;;  %v1321_v16 = vld [vmem:[#allocation13_spill] sm:$0xff] }
  0xf0   :  { %v609_v22 = vsub.f32 %v561_v23, %v593_v57  ;;  %v696_v50 = vadd.f32 -255.0, %v563_v56  ;;  %v600_v9 = vsub.f32 %v552_v14, %v584_v11  ;;  %v687_v24 = vadd.f32 -255.0, %v554_v33  ;;  %v237_v57 = vld [vmem:[%s1293_s0 + $0x28] sm:$0xff] }
  0xf1   :  { %v608_v18 = vsub.f32 %v560_v38, %v592_v10  ;;  %v695_v28 = vadd.f32 -255.0, %v562_v36  ;;  %v617_v27 = vsub.f32 %v601_v21, %v1033_v4  ;;  %v587_v3 = vmax.f32 %v688_v49, 0.0  ;;  %v245_v10 = vld [vmem:[%s1293_s0 + $0x68] sm:$0xff]  ;;  %v1323_v21 = vld [vmem:[#allocation10_spill] sm:$0xff] }
  0xf2   :  { %v625_v39 = vsub.f32 %v609_v22, %v1082_v31  ;;  %v595_v59 = vmax.f32 %v696_v50, 0.0  ;;  %v616_v58 = vsub.f32 %v600_v9, %v1035_v5  ;;  %v586_v2 = vmax.f32 %v687_v24, 0.0  ;;  %v236_v5 = vld [vmem:[%s1293_s0 + $0x20] sm:$0xff]  ;;  %v1322_v44 = vld [vmem:[#allocation15_spill] sm:$0xff] }
  0xf3   :  { %v624_v1 = vsub.f32 %v608_v18, %v1084_v32  ;;  %v594_v46 = vmax.f32 %v695_v28, 0.0  ;;  %v633_v4 = vmul.f32 %v617_v27, %v1007_v55  ;;  %v603_v31 = vsub.f32 %v555_v0, %v587_v3  ;;  %v244_v9 = vld [vmem:[%s1293_s0 + $0x60] sm:$0xff]  ;;  %v247_v27 = vld [vmem:[%s1293_s0 + $0x78] sm:$0xff]  ;;  %v1325_v28 = vld [vmem:[#allocation16_spill] sm:$0xff] }
  0xf4   :  { %v641_v11 = vmul.f32 %v625_v39, %v1017_v60  ;;  %v611_v47 = vsub.f32 %v563_v56, %v595_v59  ;;  %v632_v32 = vmul.f32 %v616_v58, %v1003_v53  ;;  %v602_v12 = vsub.f32 %v554_v33, %v586_v2  ;;  %v1203_v33 = vpop.permute.xlu0 %486  ;;  %v1324_v50 = vld [vmem:[#allocation14_spill] sm:$0xff]  ;;  %v1233_v58 = vpop.permute.xlu1 %501 }
  0xf5   :  { %v640_v51 = vmul.f32 %v624_v1, %v1019_v61  ;;  %v610_v18 = vsub.f32 %v562_v36, %v594_v46  ;;  %650 = vst.msk [vmem:[%s1294_s5 + $0x8] sm:$0xff] %vm648_vm1, %v633_v4  ;;  %v619_v55 = vsub.f32 %v603_v31, %v1037_v6  ;;  %v253_v53 = vadd.f32 %v1101_v25, %v237_v57  ;;  %v1326_v31 = vld [vmem:[#allocation11_spill] sm:$0xff] }
  0xf6   :  { %658 = vst.msk [vmem:[%s1294_s5 + $0x48] sm:$0xff] %vm648_vm1, %v641_v11  ;;  %v627_v56 = vsub.f32 %v611_v47, %v1113_v37  ;;  %v261_v60 = vadd.f32 %v1103_v26, %v245_v10  ;;  %649 = vst.msk [vmem:[%s1294_s5] sm:$0xff] %vm648_vm1, %v632_v32  ;;  %v618_v61 = vsub.f32 %v602_v12, %v1039_v7  ;;  %v239_v26 = vld [vmem:[%s1293_s0 + $0x38] sm:$0xff] }
  0xf7   :  { %657 = vst.msk [vmem:[%s1294_s5 + $0x40] sm:$0xff] %vm648_vm1, %v640_v51  ;;  %v626_v0 = vsub.f32 %v610_v18, %v1117_v43  ;;  %v252_v6 = vadd.f32 %v236_v5, %v1107_v34  ;;  %v260_v25 = vadd.f32 %v244_v9, %v1109_v35  ;;  %v635_v36 = vmul.f32 %v619_v55, %v1005_v54  ;;  %v238_v34 = vld [vmem:[%s1293_s0 + $0x30] sm:$0xff] }
  0xf8   :  { %v643_v37 = vmul.f32 %v627_v56, %v1021_v62  ;;  %v387_v7 = vmul.f32 %v1093_v42, %v253_v53  ;;  %v403_v43 = vmul.f32 %v1115_v41, %v261_v60  ;;  %v246_v35 = vld [vmem:[%s1293_s0 + $0x70] sm:$0xff]  ;;  %v634_v23 = vmul.f32 %v618_v61, %v1001_v52  ;;  %v1235_v10 = vpop.permute.xlu0 %496 }
  0xf9   :  { %v642_v54 = vmul.f32 %v626_v0, %v1023_v63  ;;  %v385_v62 = vmul.f32 %v1097_v20, %v252_v6  ;;  %v401_v42 = vmul.f32 %v1121_v48, %v260_v25  ;;  %652 = vst.msk [vmem:[%s1294_s5 + $0x18] sm:$0xff] %vm648_vm1, %v635_v36  ;;  %v255_v63 = vadd.f32 %v1125_v13, %v239_v26  ;;  %v1327_v51 = vld [vmem:[#allocation12_spill] sm:$0xff] }
  0xfa   :  { %660 = vst.msk [vmem:[%s1294_s5 + $0x58] sm:$0xff] %vm648_vm1, %v643_v37  ;;  %v758_v41 = vround.rtne.f32 %v387_v7  ;;  %v766_v52 = vround.rtne.f32 %v403_v43  ;;  %v263_v20 = vadd.f32 %v1127_v15, %v247_v27  ;;  %651 = vst.msk [vmem:[%s1294_s5 + $0x10] sm:$0xff] %vm648_vm1, %v634_v23  ;;  %v254_v38 = vadd.f32 %v238_v34, %v1131_v29 }
  0xfb   :  { %659 = vst.msk [vmem:[%s1294_s5 + $0x50] sm:$0xff] %vm648_vm1, %v642_v54  ;;  %v757_v48 = vround.rtne.f32 %v385_v62  ;;  %v765_v14 = vround.rtne.f32 %v401_v42  ;;  %v262_v40 = vadd.f32 %v246_v35, %v1133_v30  ;;  %v391_v17 = vmul.f32 %v1321_v16, %v255_v63 }
  0xfc   :  { %v509_v13 = vadd.f32 %v758_v41, %v1044_v8  ;;  %v517_v15 = vadd.f32 %v766_v52, %v1197_v19  ;;  %v407_v45 = vmul.f32 %v1322_v44, %v263_v20  ;;  %v389_v24 = vmul.f32 %v1324_v50, %v254_v38 }
  0xfd   :  { %v508_v22 = vadd.f32 %v757_v48, %v1323_v21  ;;  %v516_v49 = vadd.f32 %v765_v14, %v1203_v33  ;;  %v405_v39 = vmul.f32 %v1325_v28, %v262_v40  ;;  %v760_v59 = vround.rtne.f32 %v391_v17 }
  0xfe   :  { %v525_v3 = vsub.f32 0.0, %v509_v13  ;;  %v533_v29 = vsub.f32 0.0, %v517_v15  ;;  %v768_v30 = vround.rtne.f32 %v407_v45  ;;  %v759_v46 = vround.rtne.f32 %v389_v24 }
  0xff   :  { %v524_v1 = vsub.f32 0.0, %v508_v22  ;;  %v532_v2 = vsub.f32 0.0, %v516_v49  ;;  %v767_v57 = vround.rtne.f32 %v405_v39  ;;  %v511_v47 = vadd.f32 %v760_v59, %v1326_v31  ;;  %v1329_v59 = vld [vmem:[#allocation6_spill] sm:$0xff] }
 0x100   :  { %v541_v4 = vmax.f32 %v525_v3, 0.0  ;;  %v549_v11 = vmax.f32 %v533_v29, 0.0  ;;  %v519_v5 = vadd.f32 %v768_v30, %v1233_v58  ;;  %v510_v12 = vadd.f32 %v759_v46, %v1327_v51  ;;  %v1328_v3 = vld [vmem:[#allocation2_spill] sm:$0xff]  ;;  %v1330_v46 = vld [vmem:[#allocation3_spill] sm:$0xff] }
 0x101   :  { %v540_v9 = vmax.f32 %v524_v1, 0.0  ;;  %v548_v32 = vmax.f32 %v532_v2, 0.0  ;;  %v518_v18 = vadd.f32 %v767_v57, %v1235_v10  ;;  %v527_v53 = vsub.f32 0.0, %v511_v47 }
 0x102   :  { %v557_v55 = vadd.f32 %v541_v4, %v509_v13  ;;  %v565_v56 = vadd.f32 %v549_v11, %v517_v15  ;;  %v535_v60 = vsub.f32 0.0, %v519_v5  ;;  %v526_v6 = vsub.f32 0.0, %v510_v12  ;;  %v1331_v4 = vld [vmem:[#allocation7_spill] sm:$0xff] }
 0x103   :  { %v556_v61 = vadd.f32 %v540_v9, %v508_v22  ;;  %v564_v0 = vadd.f32 %v548_v32, %v516_v49  ;;  %v534_v25 = vsub.f32 0.0, %v518_v18  ;;  %v543_v36 = vmax.f32 %v527_v53, 0.0  ;;  %v1332_v9 = vld [vmem:[#allocation4_spill] sm:$0xff] }
 0x104   :  { %v690_v26 = vadd.f32 -255.0, %v557_v55  ;;  %v698_v27 = vadd.f32 -255.0, %v565_v56  ;;  %v551_v37 = vmax.f32 %v535_v60, 0.0  ;;  %v542_v34 = vmax.f32 %v526_v6, 0.0 }
 0x105   :  { %v689_v7 = vadd.f32 -255.0, %v556_v61  ;;  %v697_v43 = vadd.f32 -255.0, %v564_v0  ;;  %v550_v35 = vmax.f32 %v534_v25, 0.0  ;;  %v559_v62 = vadd.f32 %v543_v36, %v511_v47 }
 0x106   :  { %v589_v23 = vmax.f32 %v690_v26, 0.0  ;;  %v597_v54 = vmax.f32 %v698_v27, 0.0  ;;  %v567_v42 = vadd.f32 %v551_v37, %v519_v5  ;;  %v558_v63 = vadd.f32 %v542_v34, %v510_v12  ;;  %v1333_v12 = vld [vmem:[#allocation8_spill] sm:$0xff] }
 0x107   :  { %v588_v41 = vmax.f32 %v689_v7, 0.0  ;;  %v596_v52 = vmax.f32 %v697_v43, 0.0  ;;  %v566_v20 = vadd.f32 %v550_v35, %v518_v18  ;;  %v692_v38 = vadd.f32 -255.0, %v559_v62  ;;  %v1334_v18 = vld [vmem:[#allocation5_spill] sm:$0xff] }
 0x108   :  { %v605_v48 = vsub.f32 %v557_v55, %v589_v23  ;;  %v613_v14 = vsub.f32 %v565_v56, %v597_v54  ;;  %v700_v40 = vadd.f32 -255.0, %v567_v42  ;;  %v691_v16 = vadd.f32 -255.0, %v558_v63  ;;  %v1335_v55 = vld [vmem:[#allocation9_spill] sm:$0xff] }
 0x109   :  { %v604_v13 = vsub.f32 %v556_v61, %v588_v41  ;;  %v612_v15 = vsub.f32 %v564_v0, %v596_v52  ;;  %v699_v17 = vadd.f32 -255.0, %v566_v20  ;;  %v591_v22 = vmax.f32 %v692_v38, 0.0 }
 0x10a   :  { %v621_v44 = vsub.f32 %v605_v48, %v1044_v8  ;;  %v629_v45 = vsub.f32 %v613_v14, %v1197_v19  ;;  %v599_v49 = vmax.f32 %v700_v40, 0.0  ;;  %v590_v28 = vmax.f32 %v691_v16, 0.0 }
 0x10b   :  { %v620_v50 = vsub.f32 %v604_v13, %v1323_v21  ;;  %v628_v24 = vsub.f32 %v612_v15, %v1203_v33  ;;  %v598_v39 = vmax.f32 %v699_v17, 0.0  ;;  %v607_v1 = vsub.f32 %v559_v62, %v591_v22 }
 0x10c   :  { %v637_v29 = vmul.f32 %v621_v44, %v1328_v3  ;;  %v645_v30 = vmul.f32 %v629_v45, %v1329_v59  ;;  %v615_v2 = vsub.f32 %v567_v42, %v599_v49  ;;  %v606_v11 = vsub.f32 %v558_v63, %v590_v28 }
 0x10d   :  { %v636_v57 = vmul.f32 %v620_v50, %v1330_v46  ;;  %v644_v8 = vmul.f32 %v628_v24, %v1331_v4  ;;  %v614_v19 = vsub.f32 %v566_v20, %v598_v39  ;;  %v623_v33 = vsub.f32 %v607_v1, %v1326_v31 }
 0x10e   :  { %654 = vst.msk [vmem:[%s1294_s5 + $0x28] sm:$0xff] %vm648_vm1, %v637_v29  ;;  %662 = vst.msk [vmem:[%s1294_s5 + $0x68] sm:$0xff] %vm648_vm1, %v645_v30  ;;  %v631_v21 = vsub.f32 %v615_v2, %v1233_v58  ;;  %v622_v47 = vsub.f32 %v606_v11, %v1327_v51 }
 0x10f   :  { %653 = vst.msk [vmem:[%s1294_s5 + $0x20] sm:$0xff] %vm648_vm1, %v636_v57  ;;  %661 = vst.msk [vmem:[%s1294_s5 + $0x60] sm:$0xff] %vm648_vm1, %v644_v8  ;;  %v630_v5 = vsub.f32 %v614_v19, %v1235_v10  ;;  %v639_v32 = vmul.f32 %v623_v33, %v1332_v9 }
 0x110   :  { %v647_v31 = vmul.f32 %v631_v21, %v1333_v12  ;;  %v638_v58 = vmul.f32 %v622_v47, %v1334_v18 }
 0x111   :  { %v646_v56 = vmul.f32 %v630_v5, %v1335_v55  ;;  %656 = vst.msk [vmem:[%s1294_s5 + $0x38] sm:$0xff] %vm648_vm1, %v639_v32 }
 0x112   :  { %664 = vst.msk [vmem:[%s1294_s5 + $0x78] sm:$0xff] %vm648_vm1, %v647_v31  ;;  %655 = vst.msk [vmem:[%s1294_s5 + $0x30] sm:$0xff] %vm648_vm1, %v638_v58 }
 0x113   :  { %663 = vst.msk [vmem:[%s1294_s5 + $0x70] sm:$0xff] %vm648_vm1, %v646_v56 }

</bundles_post_ra>
